<compile_context>
chip_gen: v7x
topology: tpu7x:2x2x1
jax: 0.10.0
libtpu: 0.0.40
codegen_flags: <defaults>
</compile_context>

<pallas_src>
import jax
import jax.numpy as jnp
from jax import lax
from jax.experimental import pallas as pl
from jax.experimental.pallas import tpu as pltpu

NUM_FEATURES = 10
DROPOUT_P = 0.5
DROPOUT_SCALE = 1.0 / (1.0 - DROPOUT_P)  # = 2.0
BN_EPS = 1e-5

_GOLDEN = 0x9E3779B9
_SM_MUL1 = 0x7FEB352D
_SM_MUL2 = 0x846CA68B

_VMEM_LIMIT = 32 * 1024 * 1024


def _splitmix32(h):
    """Stateless 32-bit mixer (splitmix32 finalizer); h is uint32."""
    h = h ^ (h >> jnp.uint32(16))
    h = h * jnp.uint32(_SM_MUL1)
    h = h ^ (h >> jnp.uint32(15))
    h = h * jnp.uint32(_SM_MUL2)
    h = h ^ (h >> jnp.uint32(16))
    return h


def _keep_mask(seed_i32, tile_idx, c, tile_n):
    """Bernoulli(keep=0.5) mask for a (C, tile_n) tile.

    One hash per batch column; feature row r takes bit r of the 32-bit hash.
    Deterministic per (seed, global batch index, feature), so it can be
    regenerated identically by every pass and by _reference_forward.
    """
    col = lax.broadcasted_iota(jnp.int32, (1, tile_n), 1).astype(jnp.uint32)
    gcol = col + jnp.uint32(tile_n) * tile_idx.astype(jnp.uint32)
    h = _splitmix32(gcol ^ (seed_i32.astype(jnp.uint32) * jnp.uint32(_GOLDEN)))
    h = jnp.broadcast_to(h, (c, tile_n))
    row = lax.broadcasted_iota(jnp.int32, (c, tile_n), 0).astype(jnp.uint32)
    return ((h >> row) & jnp.uint32(1)) == jnp.uint32(1)


# --------------------------------------------------------------------------
# Fused fast path: whole (lane-padded) batch fits in a single tile.
# --------------------------------------------------------------------------
def _fused_kernel(scalar_ref, x_ref, gb_ref, o_ref):
    c, tile_n = x_ref.shape
    seed = scalar_ref[0]
    n_true = scalar_ref[1]

    keep = _keep_mask(seed, jnp.int32(0), c, tile_n)
    valid = lax.broadcasted_iota(jnp.int32, (c, tile_n), 1) < n_true

    x = x_ref[...].astype(jnp.float32)
    dropped = jnp.where(jnp.logical_and(keep, valid),
                        x * jnp.float32(DROPOUT_SCALE), jnp.float32(0.0))

    inv_n = jnp.float32(1.0) / n_true.astype(jnp.float32)
    mean = jnp.sum(dropped, axis=-1, keepdims=True) * inv_n          # (C, 1)
    centered = jnp.where(valid, dropped - mean, jnp.float32(0.0))
    var = jnp.sum(centered * centered, axis=-1, keepdims=True) * inv_n
    inv_std = lax.rsqrt(var + jnp.float32(BN_EPS))

    gamma = gb_ref[:, 0:1]
    beta = gb_ref[:, 1:2]
    o_ref[...] = (centered * (inv_std * gamma) + beta).astype(o_ref.dtype)


# --------------------------------------------------------------------------
# Streaming path, pass 1: per-tile partial (sum, sum-of-squares).
# --------------------------------------------------------------------------
def _stats_kernel(scalar_ref, x_ref, stats_ref):
    c, tile_n = x_ref.shape
    t = pl.program_id(0)
    seed = scalar_ref[0]
    n_true = scalar_ref[1]

    keep = _keep_mask(seed, t, c, tile_n)
    col = lax.broadcasted_iota(jnp.int32, (c, tile_n), 1)
    valid = (col + t * tile_n) < n_true            # mask the tail tile's lanes

    x = x_ref[...].astype(jnp.float32)
    dropped = jnp.where(jnp.logical_and(keep, valid),
                        x * jnp.float32(DROPOUT_SCALE), jnp.float32(0.0))

    s = jnp.sum(dropped, axis=-1, keepdims=True)                      # (C, 1)
    sq = jnp.sum(dropped * dropped, axis=-1, keepdims=True)           # (C, 1)
    stats_ref[...] = jnp.concatenate([s, sq], axis=-1)[None]          # (1,C,2)


# --------------------------------------------------------------------------
# Streaming path, pass 2: regenerate mask, normalize, store.
# --------------------------------------------------------------------------
def _normalize_kernel(scalar_ref, x_ref, params_ref, o_ref):
    c, tile_n = x_ref.shape
    t = pl.program_id(0)
    seed = scalar_ref[0]

    keep = _keep_mask(seed, t, c, tile_n)
    x = x_ref[...].astype(jnp.float32)
    dropped = jnp.where(keep, x * jnp.float32(DROPOUT_SCALE), jnp.float32(0.0))

    scale = params_ref[:, 0:1]                     # gamma * inv_std
    shift = params_ref[:, 1:2]                     # beta - mean * gamma * inv_std
    o_ref[...] = (dropped * scale + shift).astype(o_ref.dtype)


def simple_test_model_forward(x, gamma, beta, seed, *, max_tile_n=32768):
    """x: (N, C) float; gamma/beta: (C,); seed: int.  Returns (N, C) float32."""
    n, c = x.shape
    assert c == NUM_FEATURES
    assert max_tile_n % 128 == 0

    # Lane-dense layout: batch on the 128-lane axis, C=10 features on sublanes.
    xt = jnp.swapaxes(x, 0, 1)                                  # (C, N)
    scalars = jnp.asarray([seed, n], dtype=jnp.int32)           # SMEM prefetch
    gamma32 = gamma.astype(jnp.float32)
    beta32 = beta.astype(jnp.float32)

    lanes = 128 * pl.cdiv(n, 128)

    if lanes <= max_tile_n:
        # ---- fused single-block path: read x once, write once ----
        tile_n = lanes
        n_pad = tile_n
        gb = jnp.stack([gamma32, beta32], axis=-1)              # (C, 2)
        out_t = pl.pallas_call(
            _fused_kernel,
            out_shape=jax.ShapeDtypeStruct((c, n_pad), jnp.float32),
            grid_spec=pltpu.PrefetchScalarGridSpec(
                num_scalar_prefetch=1,
                grid=(1,),
                in_specs=[
                    pl.BlockSpec((c, tile_n), lambda t, *_: (0, 0)),
                    pl.BlockSpec((c, 2), lambda t, *_: (0, 0)),
                ],
                out_specs=pl.BlockSpec((c, tile_n), lambda t, *_: (0, 0)),
            ),
            compiler_params=pltpu.CompilerParams(
                dimension_semantics=("arbitrary",),
                vmem_limit_bytes=_VMEM_LIMIT,
            ),
        )(scalars, xt, gb)
    else:
        # ---- streaming two-call path ----
        tile_n = max_tile_n
        num_tiles = pl.cdiv(n, tile_n)
        n_pad = tile_n * num_tiles

        # Pass 1: per-tile partial sums (parallel over tiles -> both v7x TCs).
        stats = pl.pallas_call(
            _stats_kernel,
            out_shape=jax.ShapeDtypeStruct((num_tiles, c, 2), jnp.float32),
            grid_spec=pltpu.PrefetchScalarGridSpec(
                num_scalar_prefetch=1,
                grid=(num_tiles,),
                in_specs=[pl.BlockSpec((c, tile_n), lambda t, *_: (0, t))],
                out_specs=pl.BlockSpec((1, c, 2), lambda t, *_: (t, 0, 0)),
            ),
            compiler_params=pltpu.CompilerParams(
                dimension_semantics=("parallel",),
                vmem_limit_bytes=_VMEM_LIMIT,
            ),
        )(scalars, xt)

        # Tiny JAX-side reduction: batch mean / biased batch variance.
        totals = jnp.sum(stats, axis=0)                         # (C, 2)
        inv_n = jnp.float32(1.0 / n)
        mean = totals[:, 0] * inv_n
        var = jnp.maximum(totals[:, 1] * inv_n - mean * mean, 0.0)
        inv_std = lax.rsqrt(var + jnp.float32(BN_EPS))
        scale = gamma32 * inv_std
        shift = beta32 - mean * scale
        params = jnp.stack([scale, shift], axis=-1)             # (C, 2)

        # Pass 2: regenerate the same dropout mask, normalize, store.
        out_t = pl.pallas_call(
            _normalize_kernel,
            out_shape=jax.ShapeDtypeStruct((c, n_pad), jnp.float32),
            grid_spec=pltpu.PrefetchScalarGridSpec(
                num_scalar_prefetch=1,
                grid=(num_tiles,),
                in_specs=[
                    pl.BlockSpec((c, tile_n), lambda t, *_: (0, t)),
                    pl.BlockSpec((c, 2), lambda t, *_: (0, 0)),
                ],
                out_specs=pl.BlockSpec((c, tile_n), lambda t, *_: (0, t)),
            ),
            compiler_params=pltpu.CompilerParams(
                dimension_semantics=("parallel",),
                vmem_limit_bytes=_VMEM_LIMIT,
            ),
        )(scalars, xt, params)

    return jnp.swapaxes(out_t[:, :n], 0, 1)                     # back to (N, C)


def _reference_forward(x, gamma, beta, seed):
    """Pure-JAX reference using the identical hash-based dropout mask."""
    n, c = x.shape
    col = jnp.arange(n, dtype=jnp.uint32)[:, None]              # batch index
    h = _splitmix32(col ^ (jnp.uint32(seed) * jnp.uint32(_GOLDEN)))
    row = jnp.arange(c, dtype=jnp.uint32)[None, :]              # feature index
    keep = ((h >> row) & jnp.uint32(1)) == jnp.uint32(1)
    dropped = jnp.where(keep, x.astype(jnp.float32) * jnp.float32(DROPOUT_SCALE),
                        jnp.float32(0.0))
    mean = jnp.mean(dropped, axis=0, keepdims=True)
    var = jnp.mean((dropped - mean) ** 2, axis=0, keepdims=True)
    return (dropped - mean) / jnp.sqrt(var + BN_EPS) * gamma + beta


if __name__ == "__main__":
    key = jax.random.PRNGKey(0)
    batch = 8
    x = jax.random.normal(key, (batch, NUM_FEATURES), dtype=jnp.float32)

    # BatchNorm1d default init: weight = 1, bias = 0 (deterministic).
    gamma = jnp.ones((NUM_FEATURES,), dtype=jnp.float32)
    beta = jnp.zeros((NUM_FEATURES,), dtype=jnp.float32)

    # Small shape -> fused single-block path.
    out = simple_test_model_forward(x, gamma, beta, seed=0)
    out = jax.block_until_ready(out)
    assert out.shape == (batch, NUM_FEATURES)
    assert out.dtype == jnp.float32
    ref = _reference_forward(x, gamma, beta, seed=0)
    assert bool(jnp.allclose(out, ref, rtol=1e-3, atol=1e-3)), "fused path mismatch"

    # Also exercise the streaming stats+normalize path (multi-tile, tail mask).
    x2 = jax.random.normal(jax.random.PRNGKey(1), (1000, NUM_FEATURES),
                           dtype=jnp.float32)
    out2 = jax.block_until_ready(
        simple_test_model_forward(x2, gamma, beta, seed=3, max_tile_n=256))
    ref2 = _reference_forward(x2, gamma, beta, seed=3)
    assert bool(jnp.allclose(out2, ref2, rtol=1e-3, atol=1e-3)), \
        "streaming path mismatch"

    print("KERNEL_OK")
</pallas_src>

<mosaic_0001>
module attributes {stable_mosaic.version = 11 : i64} {
  func.func @_fused_kernel(%arg0: i32, %arg1: memref<2xi32, #tpu.memory_space<smem>>, %arg2: memref<10x128xf32, #tpu.memory_space<vmem>>, %arg3: memref<10x2xf32, #tpu.memory_space<vmem>>, %arg4: memref<10x128xf32, #tpu.memory_space<vmem>>) attributes {dimension_semantics = [#tpu.dimension_semantics<arbitrary>], iteration_bounds = array<i64: 1>, scalar_prefetch = 1 : i64, scratch_operands = 0 : i64, tpu.core_type = #tpu.core_type<tc>, window_params = [{transform_indices = @transform_0, window_bounds = array<i64: 10, 128>}, {pipeline_mode = #tpu.pipeline_mode<synchronous>, transform_indices = @transform_1, window_bounds = array<i64: 10, 2>}, {pipeline_mode = #tpu.pipeline_mode<synchronous>, transform_indices = @transform_2, window_bounds = array<i64: 10, 128>}]} {
    %c0 = arith.constant 0 : index
    %0 = memref.load %arg1[%c0] : memref<2xi32, #tpu.memory_space<smem>>
    %c1 = arith.constant 1 : index
    %1 = memref.load %arg1[%c1] : memref<2xi32, #tpu.memory_space<smem>>
    %2 = tpu.iota {dimensions = array<i32: 1>} : vector<1x128xi32>
    %c128_i32 = arith.constant 128 : i32
    %c0_i32 = arith.constant 0 : i32
    %3 = arith.muli %c128_i32, %c0_i32 : i32
    %4 = vector.broadcast %3 : i32 to vector<1x128xi32>
    %5 = arith.addi %2, %4 : vector<1x128xi32>
    %c-1640531527_i32 = arith.constant -1640531527 : i32
    %6 = arith.muli %0, %c-1640531527_i32 : i32
    %7 = vector.broadcast %6 : i32 to vector<1x128xi32>
    %8 = arith.xori %5, %7 : vector<1x128xi32>
    %c16_i32 = arith.constant 16 : i32
    %9 = vector.broadcast %c16_i32 : i32 to vector<1x128xi32>
    %10 = arith.shrui %8, %9 : vector<1x128xi32>
    %11 = arith.xori %8, %10 : vector<1x128xi32>
    %c2146121005_i32 = arith.constant 2146121005 : i32
    %12 = vector.broadcast %c2146121005_i32 : i32 to vector<1x128xi32>
    %13 = arith.muli %11, %12 : vector<1x128xi32>
    %c15_i32 = arith.constant 15 : i32
    %14 = vector.broadcast %c15_i32 : i32 to vector<1x128xi32>
    %15 = arith.shrui %13, %14 : vector<1x128xi32>
    %16 = arith.xori %13, %15 : vector<1x128xi32>
    %c-2073254261_i32 = arith.constant -2073254261 : i32
    %17 = vector.broadcast %c-2073254261_i32 : i32 to vector<1x128xi32>
    %18 = arith.muli %16, %17 : vector<1x128xi32>
    %c16_i32_0 = arith.constant 16 : i32
    %19 = vector.broadcast %c16_i32_0 : i32 to vector<1x128xi32>
    %20 = arith.shrui %18, %19 : vector<1x128xi32>
    %21 = arith.xori %18, %20 : vector<1x128xi32>
    %22 = vector.shape_cast %21 : vector<1x128xi32> to vector<1x128xi32>
    %23 = vector.broadcast %22 : vector<1x128xi32> to vector<10x128xi32>
    %24 = tpu.iota {dimensions = array<i32: 0>} : vector<10x128xi32>
    %25 = arith.shrui %23, %24 : vector<10x128xi32>
    %c1_i32 = arith.constant 1 : i32
    %26 = vector.broadcast %c1_i32 : i32 to vector<10x128xi32>
    %27 = arith.andi %25, %26 : vector<10x128xi32>
    %c1_i32_1 = arith.constant 1 : i32
    %28 = vector.broadcast %c1_i32_1 : i32 to vector<10x128xi32>
    %29 = arith.cmpi eq, %27, %28 : vector<10x128xi32>
    %30 = tpu.iota {dimensions = array<i32: 1>} : vector<10x128xi32>
    %31 = vector.broadcast %1 : i32 to vector<10x128xi32>
    %32 = arith.cmpi slt, %30, %31 : vector<10x128xi32>
    %c0_2 = arith.constant 0 : index
    %c0_3 = arith.constant 0 : index
    %33 = vector.load %arg2[%c0_2, %c0_3] : memref<10x128xf32, #tpu.memory_space<vmem>>, vector<10x128xf32>
    %34 = arith.andi %29, %32 : vector<10x128xi1>
    %cst = arith.constant 2.000000e+00 : f32
    %35 = vector.broadcast %cst : f32 to vector<10x128xf32>
    %36 = arith.mulf %33, %35 : vector<10x128xf32>
    %cst_4 = arith.constant 0.000000e+00 : f32
    %37 = vector.broadcast %cst_4 : f32 to vector<10x128xf32>
    %38 = arith.select %34, %36, %37 : vector<10x128xi1>, vector<10x128xf32>
    %39 = arith.sitofp %1 : i32 to f32
    %cst_5 = arith.constant 1.000000e+00 : f32
    %40 = arith.divf %cst_5, %39 : f32
    %cst_6 = arith.constant dense<0.000000e+00> : vector<10xf32>
    %41 = vector.multi_reduction <add>, %38, %cst_6 [1] : vector<10x128xf32> to vector<10xf32>
    %42 = vector.shape_cast %41 : vector<10xf32> to vector<10x1xf32>
    %43 = vector.broadcast %40 : f32 to vector<10x1xf32>
    %44 = arith.mulf %42, %43 : vector<10x1xf32>
    %45 = vector.broadcast %44 : vector<10x1xf32> to vector<10x128xf32>
    %46 = arith.subf %38, %45 : vector<10x128xf32>
    %cst_7 = arith.constant 0.000000e+00 : f32
    %47 = vector.broadcast %cst_7 : f32 to vector<10x128xf32>
    %48 = arith.select %32, %46, %47 : vector<10x128xi1>, vector<10x128xf32>
    %49 = arith.mulf %48, %48 : vector<10x128xf32>
    %cst_8 = arith.constant dense<0.000000e+00> : vector<10xf32>
    %50 = vector.multi_reduction <add>, %49, %cst_8 [1] : vector<10x128xf32> to vector<10xf32>
    %51 = vector.shape_cast %50 : vector<10xf32> to vector<10x1xf32>
    %52 = vector.broadcast %40 : f32 to vector<10x1xf32>
    %53 = arith.mulf %51, %52 : vector<10x1xf32>
    %cst_9 = arith.constant 9.99999974E-6 : f32
    %54 = vector.broadcast %cst_9 : f32 to vector<10x1xf32>
    %55 = arith.addf %53, %54 : vector<10x1xf32>
    %56 = math.rsqrt %55 : vector<10x1xf32>
    %c0_10 = arith.constant 0 : index
    %c0_11 = arith.constant 0 : index
    %57 = vector.load %arg3[%c0_10, %c0_11] : memref<10x2xf32, #tpu.memory_space<vmem>>, vector<10x1xf32>
    %c0_12 = arith.constant 0 : index
    %c1_13 = arith.constant 1 : index
    %58 = vector.load %arg3[%c0_12, %c1_13] : memref<10x2xf32, #tpu.memory_space<vmem>>, vector<10x1xf32>
    %59 = arith.mulf %56, %57 : vector<10x1xf32>
    %60 = vector.broadcast %59 : vector<10x1xf32> to vector<10x128xf32>
    %61 = arith.mulf %48, %60 : vector<10x128xf32>
    %62 = vector.broadcast %58 : vector<10x1xf32> to vector<10x128xf32>
    %63 = arith.addf %61, %62 : vector<10x128xf32>
    %c0_14 = arith.constant 0 : index
    %c0_15 = arith.constant 0 : index
    %64 = vector.load %arg4[%c0_14, %c0_15] : memref<10x128xf32, #tpu.memory_space<vmem>>, vector<10x128xf32>
    tpu.vector_store %arg4[%c0_14, %c0_15], %63 {strides = array<i32>} : memref<10x128xf32, #tpu.memory_space<vmem>>, vector<10x128xf32>,
    return
  }
  func.func @transform_0(%arg0: i32, %arg1: memref<2xi32, #tpu.memory_space<smem>>) -> (i32, i32) {
    %c0_i32 = arith.constant 0 : i32
    %c0_i32_0 = arith.constant 0 : i32
    %c0_i32_1 = arith.constant 0 : i32
    return %c0_i32, %c0_i32_0 : i32, i32
  }
  func.func @transform_1(%arg0: i32, %arg1: memref<2xi32, #tpu.memory_space<smem>>) -> (i32, i32) {
    %c0_i32 = arith.constant 0 : i32
    %c0_i32_0 = arith.constant 0 : i32
    %c0_i32_1 = arith.constant 0 : i32
    return %c0_i32, %c0_i32_0 : i32, i32
  }
  func.func @transform_2(%arg0: i32, %arg1: memref<2xi32, #tpu.memory_space<smem>>) -> (i32, i32) {
    %c0_i32 = arith.constant 0 : i32
    %c0_i32_0 = arith.constant 0 : i32
    %c0_i32_1 = arith.constant 0 : i32
    return %c0_i32, %c0_i32_0 : i32, i32
  }
}

</mosaic_0001>

<bundles_post_ra>
// kernel: tpu_custom_call.1
= control target key start
LH: loop header
LB: loop body
LE: loop exit
PB: predicated region body
PF: predicated region fallthrough
CT: control target
= control target key end

     0   :  { %s254_s0 = inlined_call_operand.vmem [shape: s32[2], index: 0, kind: input, shape index: {}]   ;;  %s255_s1 = inlined_call_operand.vmem [shape: f32[10,8], index: 1, kind: input, shape index: {}]   ;;  %s256_s2 = inlined_call_operand.vmem [shape: f32[10,2], index: 2, kind: input, shape index: {}]   ;;  %s257_s3 = inlined_call_operand.hbm [shape: f32[10,128], index: 3, kind: output, shape index: {}]  }
   0x1   :  { %s8_s14 = sshll.u32 %s254_s0, 4  ;;  %s9_s14 = int_to_ptr.vmem [resolvable:$true] %s8_s14 }
   0x2   :  { %s149_s15 = scalar_lea.vmem %s9_s14, 16  ;;  %p154_p1 = scmp.lt.s32.totalorder %s9_s14, %s9_s14 }
   0x3   :  { %p150_p0 = scmp.ne.s32.totalorder %s9_s14, %s149_s15  ;;  %p155_p2 = scmp.lt.s32.totalorder %s149_s15, %s149_s15 }
   0x5   :  { %p156_p3 = por %p155_p2, %p154_p1 }
   0x7   :  { %p157_p4 = pnand %p156_p3, %p150_p0 }
   0x9   :  { %160 = shalt.err (!%p157_p4)  }
   0xa   :  { %s187_s16 = smov [#allocation3]  }
   0xb   :  { %11 = dma.vmem_to_smem %s9_s14, 16, %s187_s16, [#allocation2] }
   0xc   :  { %183 = dma.done.wait [#allocation2], 16 }
   0xd   :  { %184 = vsyncadd [#allocation2], 4294967280 }
   0xe   :  { %13 = sfence }
   0xf   :  { %s19_s17 = sld [smem:[#allocation3]]  ;;  %s129_s18 = sld [smem:[#allocation3 + $0x1]]  ;;  %v21_v0 = vlaneseq }
  0x10   :  { %14 = vsyncpa [#allocation5], 0  ;;  %v46_v17 = vld [vmem:[%s255_s1 + $0x8] sm:$0x3]  ;;  %v45_v24 = vld [vmem:[%s255_s1] sm:$0xff]  ;;  %vm59_vm2 = vcmask 1041408  }
  0x11   :  { %v22_v1 = vand.u32 127, %v21_v0  ;;  %v35_v11 = vshrl.u32 %v21_v0, 7  ;;  %v50_v22 = vmul.f32 2.0, %v46_v17  ;;  %v49_v25 = vmul.f32 2.0, %v45_v24  ;;  %v83_v41 = vld [vmem:[%s256_s2] sm:$0xff]  ;;  %s190_s28 = smov [#allocation4]  }
  0x12   :  { %v188_v42 = vmov 1   ;;  %v189_v43 = vmov 0   ;;  %v84_v52 = vld [vmem:[%s256_s2 + $0x8] sm:$0x3]  ;;  %s118_s29 = sshll.u32 %s190_s28, 4  ;;  %s119_s29 = int_to_ptr.vmem [resolvable:$true] %s118_s29 }
  0x13   :  { %v36_v14 = vadd.s32 8, %v35_v11  ;;  %139 = vset.pattern.permute.xlu1 %v188_v42  ;;  %138 = vset.pattern.permute.xlu0 %v189_v43  ;;  %s161_s2 = scalar_lea.vmem %s119_s29, 256  ;;  %p166_p6 = scmp.lt.s32.totalorder %s119_s29, %s119_s29 }
  0x14   :  { %p162_p5 = scmp.ne.s32.totalorder %s119_s29, %s161_s2  ;;  %p167_p7 = scmp.lt.s32.totalorder %s161_s2, %s161_s2 }
  0x15   :  { %s23_s19 = smul.u32 2654435769, %s19_s17  ;;  %s53_s0 = scvt.s32.f32 %s129_s18  ;;  %v43_v16 = vstv %s129_s18 }
  0x16   :  { %vm219_vm0 = vcmp.lt.s32.totalorder %v22_v1, %v43_v16  ;;  %p168_p8 = por %p167_p7, %p166_p6 }
  0x17   :  { %v24_v2 = vstv %s23_s19  ;;  %v54_v3 = vstv %s53_s0 }
  0x18   :  { %v25_v4 = vxor.u32 %v24_v2, %v22_v1  ;;  %143 = vrcp.f32 %v54_v3  ;;  %p169_p9 = pnand %p168_p8, %p162_p5 }
  0x1a   :  { %v26_v5 = vshrl.u32 %v25_v4, 16 }
  0x1c   :  { %v27_v6 = vxor.u32 %v26_v5, %v25_v4 }
  0x1e   :  { %v28_v7 = vmul.u32 2146121005, %v27_v6 }
  0x20   :  { %v29_v8 = vshrl.u32 %v28_v7, 15 }
  0x22   :  { %v144_v9 = vpop.eup %143  ;;  %v30_v10 = vxor.u32 %v29_v8, %v28_v7 }
  0x23   :  { %130 = vpush %v144_v9 }
  0x24   :  { %v31_v12 = vmul.u32 2221713035, %v30_v10 }
  0x26   :  { %v32_v13 = vshrl.u32 %v31_v12, 16 }
  0x28   :  { %v33_v15 = vxor.u32 %v32_v13, %v31_v12 }
  0x2a   :  { %v38_v18 = vshrl.u32 %v33_v15, %v36_v14  ;;  %v37_v19 = vshrl.u32 %v33_v15, %v35_v11 }
  0x2c   :  { %v40_v20 = vand.u32 1, %v38_v18  ;;  %v39_v23 = vand.u32 1, %v37_v19 }
  0x2e   :  { %vm42_vm1 = vcmp.eq.s32.totalorder %v40_v20, 1  ;;  %vm41_vm3 = vcmp.eq.s32.totalorder %v39_v23, 1 }
  0x2f   :  { %vm48_vm4 = vmand %vm42_vm1, %vm219_vm0 }
  0x30   :  { %v52_v26 = vsel %vm48_vm4, %v50_v22, 0.0  ;;  %vm47_vm5 = vmand %vm41_vm3, %vm219_vm0 }
  0x31   :  { %v60_v27 = vsel %vm59_vm2, %v52_v26, 0.0  ;;  %v51_v28 = vsel %vm47_vm5, %v49_v25, 0.0 }
  0x32   :  { %61 = vadd.xlane.f32.xlu0 %v60_v27 }
  0x36   :  { %57 = vadd.xlane.f32.xlu0 %v51_v28 }
  0x54   :  { %s131_s24 = spop %130 }
  0x55   :  { %v63_v29 = vstv %s131_s24 }
  0xbf   :  { %v62_v30 = vpop.xlane.xlu0 %61 }
  0xc0   :  { %v65_v31 = vmul.f32 %v63_v29, %v62_v30 }
  0xc2   :  { %v67_v32 = vsub.f32 %v52_v26, %v65_v31 }
  0xc3   :  { %v58_v33 = vpop.xlane.xlu0 %57 }
  0xc4   :  { %v64_v34 = vmul.f32 %v63_v29, %v58_v33  ;;  %v69_v36 = vsel %vm219_vm0, %v67_v32, 0.0 }
  0xc5   :  { %v71_v39 = vmul.f32 %v69_v36, %v69_v36 }
  0xc6   :  { %v66_v35 = vsub.f32 %v51_v28, %v64_v34 }
  0xc7   :  { %v74_v40 = vsel %vm59_vm2, %v71_v39, 0.0 }
  0xc8   :  { %v68_v37 = vsel %vm219_vm0, %v66_v35, 0.0 }
  0xc9   :  { %v70_v38 = vmul.f32 %v68_v37, %v68_v37 }
  0xcb   :  { %72 = vadd.xlane.f32.xlu1 %v70_v38 }
  0xcf   :  { %75 = vadd.xlane.f32.xlu1 %v74_v40 }
  0xe0   :  { %101 = vperm.xlu1 %139, %v83_v41  }
  0xe4   :  { %140 = vset.pattern.permute.xlu1 %v189_v43 }
 0x158   :  { %v73_v44 = vpop.xlane.xlu1 %72 }
 0x159   :  { %v77_v45 = vmul.f32 %v73_v44, %v63_v29 }
 0x15b   :  { %v79_v46 = vadd.f32 1e-05, %v77_v45 }
 0x15c   :  { %v76_v47 = vpop.xlane.xlu1 %75 }
 0x15d   :  { %145 = vrsqrt.f32 %v79_v46  ;;  %v78_v48 = vmul.f32 %v76_v47, %v63_v29 }
 0x15f   :  { %v80_v49 = vadd.f32 1e-05, %v78_v48 }
 0x160   :  { %v102_v55 = vpop.permute.xlu1 %101 }
 0x161   :  { %147 = vrsqrt.f32 %v80_v49 }
 0x167   :  { %v146_v50 = vpop.eup %145 }
 0x168   :  { %v85_v51 = vmul.f32 %v146_v50, %v83_v41 }
 0x16a   :  { %89 = vperm.xlu0 %138, %v85_v51  }
 0x16b   :  { %v148_v53 = vpop.eup %147 }
 0x16c   :  { %v86_v54 = vmul.f32 %v148_v53, %v84_v52 }
 0x16e   :  { %94 = vperm.xlu1 %140, %v86_v54   ;;  %142 = vset.pattern.permute.xlu0 %v188_v42 }
 0x172   :  { %141 = vset.pattern.permute.xlu1 %v188_v42 }
 0x173   :  { %106 = vperm.xlu1 %141, %v84_v52  }
 0x1e9   :  { %v90_v56 = vpop.permute.xlu0 %89 }
 0x1ea   :  { %v97_v57 = vmul.f32 %v90_v56, %v68_v37 }
 0x1ec   :  { %v109_v58 = vadd.f32 %v102_v55, %v97_v57 }
 0x1ed   :  { %v95_v59 = vpop.permute.xlu1 %94 }
 0x1ee   :  { %111 = vst [vmem:[#allocation4] sm:$0xff] %v109_v58  ;;  %v98_v60 = vmul.f32 %v95_v59, %v69_v36 }
 0x1f2   :  { %v107_v61 = vpop.permute.xlu1 %106 }
 0x1f3   :  { %v110_v62 = vadd.f32 %v107_v61, %v98_v60 }
 0x1f5   :  { %112 = vst [vmem:[#allocation4 + $0x8] sm:$0x3] %v110_v62 }
 0x1f6   :  { %172 = shalt.err (!%p169_p9)
}
 0x1f7   :  { %s173_s5 = scalar_lea.hbm %s257_s3, 256 }
 0x1f8   :  { %p174_p10 = scmp.ne.s32.totalorder %s257_s3, %s173_s5  ;;  %p177_p11 = scmp.lt.u32.totalorder %s173_s5, %s257_s3 }
 0x1fa   :  { %p179_p12 = pnand %p177_p11, %p174_p10 }
 0x1fc   :  { %182 = shalt.err (!%p179_p12)
}
 0x1fd   :  { %s191_s10 = smov 128   ;;  %s192_s11 = smov 8  }
 0x1fe   :  { %124 = dma.vmem_to_hbm [thread:$0]  %s119_s29, 256, %s257_s3, [#allocation5], %s191_s10, %s191_s10, %s192_s11  }
 0x1ff   :  { %185 = dma.done.wait [#allocation5], 256  }
 0x200   :  { %186 = vsyncadd [#allocation5], 4294967040 }
 0x201   :  { %128 = vsyncpa [#allocation5], 1 }

</bundles_post_ra>
